<compile_context>
chip_gen: v5e
topology: v5e:2x2
jax: 0.10.0
libtpu: 0.0.40
codegen_flags: <defaults>
</compile_context>

<pallas_src>
import jax
import jax.numpy as jnp
from jax.experimental import pallas as pl
from jax.experimental.pallas import tpu as pltpu

dense_sampling_L = 20
num_rx_antenas = 6

_LANE = 128      # TPU vreg lane width
_SUBLANE = 8     # TPU vreg sublane count (f32)
_MAX_BLOCK_B = 1024  # rows per grid step; plenty under VMEM on v5e/v6e/v7x


def _round_up(x, m):
    return ((x + m - 1) // m) * m


def _analog_filter_kernel(x_ref, w_ref, o_ref):
    # x_ref: (block_b, K_pad)   w_ref: (K_pad, out_pad)   o_ref: (block_b, out_pad)
    # Plain x @ Wt on the MXU: K on RHS sublanes, N=128 on lanes (weight-stationary).
    o_ref[...] = jnp.dot(
        x_ref[...], w_ref[...], preferred_element_type=jnp.float32
    ).astype(o_ref.dtype)


def prepare_weight(weight):
    """One-time (init-time) weight prep.

    weight: (out_features, in_features) as stored by nn.Linear.
    Returns Wt_pad of shape (K_pad, out_pad) = (round_up(in,128), round_up(out,128)):
      * transposed so the kernel does a plain x @ Wt (MXU-native layout),
      * K zero-padded to a full 128-lane vreg (unmasked loads / full MXU feed),
      * out zero-padded so output stores are full (unmasked) vector stores.
    Zero padding is numerically exact: padded K rows of Wt are zero, and padded
    output columns come out as exact zeros.
    """
    out_f, in_f = weight.shape
    k_pad = _round_up(in_f, _LANE)
    out_pad = _round_up(out_f, _LANE)
    wt = weight.T  # (in_f, out_f)
    wt = jnp.pad(wt, ((0, k_pad - in_f), (0, out_pad - out_f)))
    return wt


def analog_network_forward(x, w_prepared):
    """y_pad = x @ W.T, zero-padded to (B_pad, out_pad).

    x: (B, in_features) float32.
    w_prepared: (K_pad, out_pad) from prepare_weight().
    Returns the padded output; rows >= B and columns >= out_features are exact
    zeros — slice (or ignore) them in the consumer, keeping this hot path to a
    single launch.
    """
    B, in_f = x.shape
    k_pad, out_pad = w_prepared.shape

    # Pad contraction dim to a full lane-width vreg (exact: padded weight rows are 0).
    if in_f != k_pad:
        x = jnp.pad(x, ((0, 0), (0, k_pad - in_f)))

    # Batch tile: sublane-aligned, capped so huge batches still pipeline cleanly.
    block_b = min(_MAX_BLOCK_B, _round_up(B, _SUBLANE))
    b_pad = _round_up(B, block_b)
    if b_pad != B:
        x = jnp.pad(x, ((0, b_pad - B), (0, 0)))
    grid = (b_pad // block_b,)

    flops = 2 * b_pad * k_pad * out_pad
    bytes_accessed = 4 * (b_pad * k_pad + k_pad * out_pad + b_pad * out_pad)

    return pl.pallas_call(
        _analog_filter_kernel,
        out_shape=jax.ShapeDtypeStruct((b_pad, out_pad), x.dtype),
        grid=grid,
        in_specs=[
            # x tiles stream along the batch grid axis.
            pl.BlockSpec((block_b, k_pad), lambda i: (i, 0)),
            # Same block every step -> weight DMA'd once, stays VMEM-resident.
            pl.BlockSpec((k_pad, out_pad), lambda i: (0, 0)),
        ],
        out_specs=pl.BlockSpec((block_b, out_pad), lambda i: (i, 0)),
        compiler_params=pltpu.CompilerParams(
            # Independent batch tiles: shard across both TensorCores on v7x.
            dimension_semantics=("parallel",),
        ),
        cost_estimate=pl.CostEstimate(
            flops=flops, transcendentals=0, bytes_accessed=bytes_accessed
        ),
    )(x, w_prepared)


if __name__ == "__main__":
    num_of_adc_p = 4  # small, consistent with the module's hyperparameter
    in_features = num_rx_antenas * dense_sampling_L      # 120
    out_features = num_of_adc_p * dense_sampling_L       # 80
    batch = 2

    key = jax.random.PRNGKey(0)
    kx, kw = jax.random.split(key)
    x = jax.random.normal(kx, (batch, in_features), dtype=jnp.float32)
    # Deterministic init mimicking nn.Linear's uniform(-1/sqrt(in), 1/sqrt(in))
    bound = 1.0 / jnp.sqrt(jnp.float32(in_features))
    weight = jax.random.uniform(
        kw, (out_features, in_features), dtype=jnp.float32,
        minval=-bound, maxval=bound,
    )

    # One-time, outside the per-call hot path.
    w_prepared = jax.block_until_ready(prepare_weight(weight))

    fwd = jax.jit(analog_network_forward)
    y_pad = jax.block_until_ready(fwd(x, w_prepared))

    # Consumer-side slice (outside the kernel's hot path) for the check.
    y = y_pad[:batch, :out_features]

    # Sanity check against plain-JAX reference of torch's  x @ W.T
    y_ref = x @ weight.T
    assert y.shape == (batch, out_features)
    assert jnp.allclose(y, y_ref, atol=1e-5, rtol=1e-5)
    # Padded rows / columns are exact zeros, so downstream math is unaffected.
    assert jnp.all(y_pad[:, out_features:] == 0)
    assert jnp.all(y_pad[batch:, :] == 0)

    print("KERNEL_OK")
</pallas_src>

<mosaic_0001>
module attributes {stable_mosaic.version = 11 : i64} {
  func.func @_analog_filter_kernel(%arg0: i32, %arg1: memref<8x128xf32, #tpu.memory_space<vmem>>, %arg2: memref<128x128xf32, #tpu.memory_space<vmem>>, %arg3: memref<8x128xf32, #tpu.memory_space<vmem>>) attributes {dimension_semantics = [#tpu.dimension_semantics<parallel>], iteration_bounds = array<i64: 1>, scalar_prefetch = 0 : i64, scratch_operands = 0 : i64, tpu.core_type = #tpu.core_type<tc>, window_params = [{transform_indices = @transform_0, window_bounds = array<i64: 8, 128>}, {pipeline_mode = #tpu.pipeline_mode<synchronous>, transform_indices = @transform_1, window_bounds = array<i64: 128, 128>}, {transform_indices = @transform_2, window_bounds = array<i64: 8, 128>}]} {
    %c0 = arith.constant 0 : index
    %c0_0 = arith.constant 0 : index
    %0 = vector.load %arg1[%c0, %c0_0] : memref<8x128xf32, #tpu.memory_space<vmem>>, vector<8x128xf32>
    %c0_1 = arith.constant 0 : index
    %c0_2 = arith.constant 0 : index
    %1 = vector.load %arg2[%c0_1, %c0_2] : memref<128x128xf32, #tpu.memory_space<vmem>>, vector<128x128xf32>
    %cst = arith.constant dense<0.000000e+00> : vector<8x128xf32>
    %2 = tpu.matmul %0, %1, %cst {dimension_numbers = #tpu.dot_dimension_numbers<[1], [0], [0], [1], [0, 0, 1, 1], [], []>} : vector<8x128xf32>, vector<128x128xf32>, vector<8x128xf32> -> vector<8x128xf32>
    %c0_3 = arith.constant 0 : index
    %c0_4 = arith.constant 0 : index
    %3 = vector.load %arg3[%c0_3, %c0_4] : memref<8x128xf32, #tpu.memory_space<vmem>>, vector<8x128xf32>
    tpu.vector_store %arg3[%c0_3, %c0_4], %2 {strides = array<i32>} : memref<8x128xf32, #tpu.memory_space<vmem>>, vector<8x128xf32>,
    return
  }
  func.func @transform_0(%arg0: i32) -> (i32, i32) {
    %c0_i32 = arith.constant 0 : i32
    %c0_i32_0 = arith.constant 0 : i32
    return %arg0, %c0_i32 : i32, i32
  }
  func.func @transform_1(%arg0: i32) -> (i32, i32) {
    %c0_i32 = arith.constant 0 : i32
    %c0_i32_0 = arith.constant 0 : i32
    %c0_i32_1 = arith.constant 0 : i32
    return %c0_i32, %c0_i32_0 : i32, i32
  }
  func.func @transform_2(%arg0: i32) -> (i32, i32) {
    %c0_i32 = arith.constant 0 : i32
    %c0_i32_0 = arith.constant 0 : i32
    return %arg0, %c0_i32 : i32, i32
  }
}

</mosaic_0001>

<bundles_post_ra>
// kernel: analog_network_forward.1
= control target key start
LH: loop header
LB: loop body
LE: loop exit
PB: predicated region body
PF: predicated region fallthrough
CT: control target
= control target key end

     0   :  { %7 = vsyncpa [#allocation3], 0  ;;  %s167_s0 = inlined_call_operand.vmem [shape: f32[8,128], index: 0, kind: input, shape index: {}]   ;;  %s168_s1 = inlined_call_operand.hbm [shape: f32[128,128], index: 1, kind: input, shape index: {}]   ;;  %s169_s2 = inlined_call_operand.hbm [shape: f32[8,128], index: 2, kind: output, shape index: {}]  }
   0x1   :  { %8 = vsyncpa [#allocation4], 0  ;;  %s15_s11 = sshll.u32 %s168_s1, 4  ;;  %s139_s12 = smov [#allocation2]   ;;  %s16_s11 = int_to_ptr.hbm [resolvable:$true] %s15_s11 }
   0x2   :  { %s17_s13 = sshll.u32 %s139_s12, 4  ;;  %s140_s14 = smov 128   ;;  %s18_s13 = int_to_ptr.vmem [resolvable:$true] %s17_s13 }
   0x3   :  { %s141_s15 = smov 8  }
   0x4   :  { %23 = dma.hbm_to_vmem [thread:$0]  %s16_s11, 2048, %s18_s13, [#allocation3], %s140_s14, %s140_s14, %s141_s15  }
   0x5   :  { %135 = dma.done.wait [#allocation3], 2048  }
   0x6   :  { %136 = vsyncadd [#allocation3], 4294965248  ;;  %v44_v0 = vld [vmem:[#allocation2 + $0x78] sm:$0xff]  ;;  %v43_v1 = vld [vmem:[#allocation2 + $0x70] sm:$0xff]  ;;  %s142_s17 = smov [#allocation5]   ;;  %s73_s21 = sshll.u32 %s169_s2, 4  ;;  %s74_s21 = int_to_ptr.hbm [resolvable:$true] %s73_s21 }
   0x7   :  { %45 = vmatpush.msra.mxu0 %v44_v0  ;;  %v42_v2 = vld [vmem:[#allocation2 + $0x68] sm:$0xff]  ;;  %v41_v3 = vld [vmem:[#allocation2 + $0x60] sm:$0xff]  ;;  %v40_v4 = vld [vmem:[#allocation2 + $0x58] sm:$0xff]  ;;  %s71_s18 = sshll.u32 %s142_s17, 4  ;;  %s72_s18 = int_to_ptr.vmem [resolvable:$true] %s71_s18 }
   0x8   :  { %v39_v5 = vld [vmem:[#allocation2 + $0x50] sm:$0xff]  ;;  %v38_v6 = vld [vmem:[#allocation2 + $0x48] sm:$0xff]  ;;  %v37_v7 = vld [vmem:[#allocation2 + $0x40] sm:$0xff] }
   0x9   :  { %46 = vmatpush.msra.mxu0 %v43_v1  ;;  %v36_v8 = vld [vmem:[#allocation2 + $0x38] sm:$0xff]  ;;  %v35_v9 = vld [vmem:[#allocation2 + $0x30] sm:$0xff]  ;;  %v34_v10 = vld [vmem:[#allocation2 + $0x28] sm:$0xff] }
   0xa   :  { %v33_v11 = vld [vmem:[#allocation2 + $0x20] sm:$0xff]  ;;  %v32_v12 = vld [vmem:[#allocation2 + $0x18] sm:$0xff]  ;;  %v31_v13 = vld [vmem:[#allocation2 + $0x10] sm:$0xff] }
   0xb   :  { %47 = vmatpush.msra.mxu0 %v42_v2  ;;  %v30_v14 = vld [vmem:[#allocation2 + $0x8] sm:$0xff]  ;;  %v29_v15 = vld [vmem:[#allocation2] sm:$0xff] }
   0xc   :  { %v28_v16 = vld [vmem:[%s167_s0] sm:$0xff] }
   0xd   :  { %48 = vmatpush.msra.mxu0 %v41_v3 }
   0xf   :  { %49 = vmatpush.msra.mxu0 %v40_v4 }
  0x11   :  { %50 = vmatpush.msra.mxu0 %v39_v5 }
  0x13   :  { %51 = vmatpush.msra.mxu0 %v38_v6 }
  0x15   :  { %52 = vmatpush.msra.mxu0 %v37_v7 }
  0x17   :  { %53 = vmatpush.msra.mxu0 %v36_v8 }
  0x19   :  { %54 = vmatpush.msra.mxu0 %v35_v9 }
  0x1b   :  { %55 = vmatpush.msra.mxu0 %v34_v10 }
  0x1d   :  { %56 = vmatpush.msra.mxu0 %v33_v11 }
  0x1f   :  { %57 = vmatpush.msra.mxu0 %v32_v12 }
  0x21   :  { %58 = vmatpush.msra.mxu0 %v31_v13 }
  0x23   :  { %59 = vmatpush.msra.mxu0 %v30_v14 }
  0x25   :  { %60 = vmatpush.msra.mxu0 %v29_v15 }
  0x26   :  { %61 = vmatmul.f32.vlgmr.msra.gmra.mxu0 %v28_v16 }
  0xa3   :  { %v62_v17 = vpop.f32.mrf.mxu0 }
  0xa4   :  { %65 = vst [vmem:[#allocation5] sm:$0xff] %v62_v17 }
  0xa5   :  { %76 = dma.vmem_to_hbm [thread:$0]  %s72_s18, 128, %s74_s21, [#allocation4]  }
  0xa6   :  { %137 = dma.done.wait [#allocation4], 128  }
  0xa7   :  { %138 = vsyncadd [#allocation4], 4294967168 }
  0xa8   :  { %81 = vsyncpa [#allocation3], 1 }
  0xa9   :  { %82 = vsyncpa [#allocation4], 1 }

</bundles_post_ra>
